<compile_context>
chip_gen: v6e
topology: v6e:2x2x1
jax: 0.10.0
libtpu: 0.0.40
codegen_flags: <defaults>
</compile_context>

<pallas_src>
import functools

import numpy as np
import jax
import jax.numpy as jnp
from jax.experimental import pallas as pl
from jax.experimental.pallas import tpu as pltpu


def fused_conv_tanh_maxpool_kernel(x_ref, w_ref, b_ref, mask_ref, o_ref, *,
                                   w_max, l_out):
    """Fused multi-width Conv1d + bias + tanh + masked max-over-time.

    x_ref:    (bb, L_pad, E)        activations, embedding on the lane axis
    w_ref:    (w_max*E, F_pad)      packed weights (tap-major rows, branch cols)
    b_ref:    (1, F_pad)            packed bias
    mask_ref: (l_out, F_pad)        additive mask (0 valid, -1e9 invalid)
    o_ref:    (bb, F_pad)           per-filter max over time (lane-dense)
    """
    x = x_ref[...]                                                  # (bb,Lp,E)
    # im2col: put the w_max taps side-by-side on the lane axis.
    xcat = jnp.concatenate([x[:, k:k + l_out, :] for k in range(w_max)],
                           axis=-1)                                 # (bb,Lo,K)
    # Single MXU contraction over K = w_max*E for ALL branches at once.
    y = jnp.einsum("blk,kf->blf", xcat, w_ref[...],
                   preferred_element_type=jnp.float32)              # (bb,Lo,Fp)
    y = jnp.tanh(y + b_ref[...][None, :, :])
    y = y + mask_ref[...][None, :, :]        # padded taps / times lose the max
    o_ref[...] = jnp.max(y, axis=1)                                 # (bb, Fp)


def build_fused_params(weights, biases, filters_width, num_filters, e):
    """Pack per-branch Conv1d params into one lane-dense matmul (done once)."""
    w_max = max(filters_width)
    f_total = sum(num_filters)
    f_pad = ((f_total + 127) // 128) * 128
    w_fused = np.zeros((w_max * e, f_pad), np.float32)
    b_fused = np.zeros((1, f_pad), np.float32)
    col = 0
    for w, f, wt, b in zip(filters_width, num_filters, weights, biases):
        wt = np.asarray(wt, np.float32)                  # (F, E, w) PyTorch
        for k in range(w):
            w_fused[k * e:(k + 1) * e, col:col + f] = wt[:, :, k].T   # (E, F)
        b_fused[0, col:col + f] = np.asarray(b, np.float32)
        col += f
    return jnp.asarray(w_fused), jnp.asarray(b_fused)


def build_time_mask(filters_width, num_filters, word_length, f_pad):
    """Additive mask: branch i is only valid for t < L - w_i + 1."""
    l_out = word_length - min(filters_width) + 1
    m = np.zeros((l_out, f_pad), np.float32)
    col = 0
    for w, f in zip(filters_width, num_filters):
        m[word_length - w + 1:, col:col + f] = -1e9
        col += f
    return jnp.asarray(m)


def char_cnn_forward(x_ncl, w_fused, b_fused, mask, *,
                     filters_width, num_filters):
    """x_ncl: (B, E, L) float32 (PyTorch Conv1d layout). Returns (B, sum(F))."""
    B, E, L = x_ncl.shape
    w_max = max(filters_width)
    w_min = min(filters_width)
    l_out = L - w_min + 1
    f_total = sum(num_filters)
    f_pad = w_fused.shape[1]

    # Accept the NCL -> NLE layout change once (embedding on the lane axis),
    # and zero-pad time so every branch's valid window is covered by w_max taps.
    x = jnp.transpose(x_ncl, (0, 2, 1)).astype(jnp.float32)        # (B, L, E)
    pad = w_max - w_min
    if pad:
        x = jnp.pad(x, ((0, 0), (0, pad), (0, 0)))
    l_pad = L + pad

    # Batch tile: 8-sublane aligned when divisible, whole batch otherwise.
    bb = 8 if B % 8 == 0 else B
    grid = (B // bb,)

    flops = int(sum(2 * B * (L - w + 1) * w * E * f
                    for w, f in zip(filters_width, num_filters)))
    cost = pl.CostEstimate(
        flops=flops,
        transcendentals=int(B * l_out * f_total),
        bytes_accessed=int(4 * (B * l_pad * E + w_fused.size + b_fused.size +
                                mask.size + B * f_pad)))

    kern = functools.partial(fused_conv_tanh_maxpool_kernel,
                             w_max=w_max, l_out=l_out)
    out = pl.pallas_call(
        kern,
        out_shape=jax.ShapeDtypeStruct((B, f_pad), jnp.float32),
        grid_spec=pltpu.PrefetchScalarGridSpec(
            num_scalar_prefetch=0,
            grid=grid,
            in_specs=[
                pl.BlockSpec((bb, l_pad, E), lambda i: (i, 0, 0)),
                pl.BlockSpec((w_max * E, f_pad), lambda i: (0, 0)),
                pl.BlockSpec((1, f_pad), lambda i: (0, 0)),
                pl.BlockSpec((l_out, f_pad), lambda i: (0, 0)),
            ],
            out_specs=pl.BlockSpec((bb, f_pad), lambda i: (i, 0)),
        ),
        compiler_params=pltpu.CompilerParams(
            dimension_semantics=("parallel",)),
        cost_estimate=cost,
    )(x, w_fused, b_fused, mask)

    return out[:, :f_total]


def _reference_forward(x_ncl, weights, biases, filters_width, num_filters):
    """Plain-JAX reference (conv1d via lax.conv_general_dilated)."""
    outs = []
    for w, f, W, b in zip(filters_width, num_filters, weights, biases):
        y = jax.lax.conv_general_dilated(
            x_ncl.astype(jnp.float32), W.astype(jnp.float32),
            window_strides=(1,), padding="VALID",
            dimension_numbers=("NCH", "OIH", "NCH"))
        y = jnp.tanh(y + b.reshape(1, f, 1))
        outs.append(jnp.max(y, axis=2))
    return jnp.concatenate(outs, axis=1)


if __name__ == "__main__":
    # Module config (synthetic, deterministic).
    filters_width = [1, 2, 3]
    num_filters = [8, 16, 8]
    char_embedding_size = 16   # E (Conv1d in_channels)
    word_length = 12           # L
    batch = 2                  # B

    key = jax.random.PRNGKey(0)
    kx, *kws = jax.random.split(key, 1 + 2 * len(filters_width))

    # Input in PyTorch Conv1d layout (B, E, L).
    x = jax.random.normal(kx, (batch, char_embedding_size, word_length),
                          dtype=jnp.float32)

    # Deterministic parameter init: Conv1d weight (F, E, w), bias (F,).
    weights, biases = [], []
    for i, (w, f) in enumerate(zip(filters_width, num_filters)):
        kw, kb = kws[2 * i], kws[2 * i + 1]
        fan_in = char_embedding_size * w
        scale = 1.0 / jnp.sqrt(jnp.float32(fan_in))
        weights.append(scale * jax.random.normal(
            kw, (f, char_embedding_size, w), dtype=jnp.float32))
        biases.append(scale * jax.random.normal(kb, (f,), dtype=jnp.float32))

    # "Init time" packing (hoisted out of the forward path).
    w_fused, b_fused = build_fused_params(
        weights, biases, filters_width, num_filters, char_embedding_size)
    mask = build_time_mask(filters_width, num_filters, word_length,
                           w_fused.shape[1])

    fwd = jax.jit(functools.partial(char_cnn_forward,
                                    filters_width=tuple(filters_width),
                                    num_filters=tuple(num_filters)))
    out = fwd(x, w_fused, b_fused, mask)
    out = jax.block_until_ready(out)

    ref = _reference_forward(x, weights, biases, filters_width, num_filters)
    assert out.shape == (batch, sum(num_filters))
    assert jnp.allclose(out, ref, atol=1e-5, rtol=1e-5)

    print("KERNEL_OK")
</pallas_src>

<mosaic_0001>
module attributes {stable_mosaic.version = 11 : i64} {
  func.func @fused_conv_tanh_maxpool_kernel(%arg0: i32, %arg1: memref<2x14x16xf32, #tpu.memory_space<vmem>>, %arg2: memref<48x128xf32, #tpu.memory_space<vmem>>, %arg3: memref<1x128xf32, #tpu.memory_space<vmem>>, %arg4: memref<12x128xf32, #tpu.memory_space<vmem>>, %arg5: memref<2x128xf32, #tpu.memory_space<vmem>>) attributes {dimension_semantics = [#tpu.dimension_semantics<parallel>], iteration_bounds = array<i64: 1>, scalar_prefetch = 0 : i64, scratch_operands = 0 : i64, tpu.core_type = #tpu.core_type<tc>, window_params = [{transform_indices = @transform_0, window_bounds = array<i64: 2, 14, 16>}, {pipeline_mode = #tpu.pipeline_mode<synchronous>, transform_indices = @transform_1, window_bounds = array<i64: 48, 128>}, {pipeline_mode = #tpu.pipeline_mode<synchronous>, transform_indices = @transform_2, window_bounds = array<i64: 1, 128>}, {pipeline_mode = #tpu.pipeline_mode<synchronous>, transform_indices = @transform_3, window_bounds = array<i64: 12, 128>}, {transform_indices = @transform_4, window_bounds = array<i64: 2, 128>}]} {
    %c0 = arith.constant 0 : index
    %c0_0 = arith.constant 0 : index
    %c0_1 = arith.constant 0 : index
    %0 = vector.load %arg1[%c0, %c0_0, %c0_1] : memref<2x14x16xf32, #tpu.memory_space<vmem>>, vector<2x14x16xf32>
    %1 = vector.extract_strided_slice %0 {offsets = [0, 0, 0], sizes = [2, 12, 16], strides = [1, 1, 1]} : vector<2x14x16xf32> to vector<2x12x16xf32>
    %2 = vector.extract_strided_slice %0 {offsets = [0, 1, 0], sizes = [2, 12, 16], strides = [1, 1, 1]} : vector<2x14x16xf32> to vector<2x12x16xf32>
    %3 = vector.extract_strided_slice %0 {offsets = [0, 2, 0], sizes = [2, 12, 16], strides = [1, 1, 1]} : vector<2x14x16xf32> to vector<2x12x16xf32>
    %4 = tpu.concatenate %1, %2, %3 in 2 : vector<2x12x16xf32>, vector<2x12x16xf32>, vector<2x12x16xf32> -> vector<2x12x48xf32>
    %c0_2 = arith.constant 0 : index
    %c0_3 = arith.constant 0 : index
    %5 = vector.load %arg2[%c0_2, %c0_3] : memref<48x128xf32, #tpu.memory_space<vmem>>, vector<48x128xf32>
    "tpu.trace_start"() <{level = 10 : i32, message = "blk,kf->blf"}> : () -> ()
    %cst = arith.constant dense<0.000000e+00> : vector<2x12x128xf32>
    %6 = tpu.matmul %4, %5, %cst {dimension_numbers = #tpu.dot_dimension_numbers<[2], [0], [0, 1], [1], [0, 0, 0, 1, 1, 1], [], []>} : vector<2x12x48xf32>, vector<48x128xf32>, vector<2x12x128xf32> -> vector<2x12x128xf32>
    "tpu.trace_stop"() : () -> ()
    %c0_4 = arith.constant 0 : index
    %c0_5 = arith.constant 0 : index
    %7 = vector.load %arg3[%c0_4, %c0_5] : memref<1x128xf32, #tpu.memory_space<vmem>>, vector<1x128xf32>
    %8 = vector.shape_cast %7 : vector<1x128xf32> to vector<1x1x128xf32>
    %9 = vector.broadcast %8 : vector<1x1x128xf32> to vector<2x12x128xf32>
    %10 = arith.addf %6, %9 : vector<2x12x128xf32>
    %11 = math.tanh %10 : vector<2x12x128xf32>
    %c0_6 = arith.constant 0 : index
    %c0_7 = arith.constant 0 : index
    %12 = vector.load %arg4[%c0_6, %c0_7] : memref<12x128xf32, #tpu.memory_space<vmem>>, vector<12x128xf32>
    %13 = vector.shape_cast %12 : vector<12x128xf32> to vector<1x12x128xf32>
    %14 = vector.broadcast %13 : vector<1x12x128xf32> to vector<2x12x128xf32>
    %15 = arith.addf %11, %14 : vector<2x12x128xf32>
    %cst_8 = arith.constant dense<0xFF800000> : vector<2x128xf32>
    %16 = vector.multi_reduction <maximumf>, %15, %cst_8 [1] : vector<2x12x128xf32> to vector<2x128xf32>
    %c0_9 = arith.constant 0 : index
    %c0_10 = arith.constant 0 : index
    %17 = vector.load %arg5[%c0_9, %c0_10] : memref<2x128xf32, #tpu.memory_space<vmem>>, vector<2x128xf32>
    tpu.vector_store %arg5[%c0_9, %c0_10], %16 {strides = array<i32>} : memref<2x128xf32, #tpu.memory_space<vmem>>, vector<2x128xf32>,
    return
  }
  func.func @transform_0(%arg0: i32) -> (i32, i32, i32) {
    %c0_i32 = arith.constant 0 : i32
    %c0_i32_0 = arith.constant 0 : i32
    %c0_i32_1 = arith.constant 0 : i32
    return %arg0, %c0_i32, %c0_i32_0 : i32, i32, i32
  }
  func.func @transform_1(%arg0: i32) -> (i32, i32) {
    %c0_i32 = arith.constant 0 : i32
    %c0_i32_0 = arith.constant 0 : i32
    %c0_i32_1 = arith.constant 0 : i32
    return %c0_i32, %c0_i32_0 : i32, i32
  }
  func.func @transform_2(%arg0: i32) -> (i32, i32) {
    %c0_i32 = arith.constant 0 : i32
    %c0_i32_0 = arith.constant 0 : i32
    %c0_i32_1 = arith.constant 0 : i32
    return %c0_i32, %c0_i32_0 : i32, i32
  }
  func.func @transform_3(%arg0: i32) -> (i32, i32) {
    %c0_i32 = arith.constant 0 : i32
    %c0_i32_0 = arith.constant 0 : i32
    %c0_i32_1 = arith.constant 0 : i32
    return %c0_i32, %c0_i32_0 : i32, i32
  }
  func.func @transform_4(%arg0: i32) -> (i32, i32) {
    %c0_i32 = arith.constant 0 : i32
    %c0_i32_0 = arith.constant 0 : i32
    return %arg0, %c0_i32 : i32, i32
  }
}

</mosaic_0001>

<bundles_post_ra>
// kernel: char_cnn_forward.1
= control target key start
LH: loop header
LB: loop body
LE: loop exit
PB: predicated region body
PF: predicated region fallthrough
CT: control target
= control target key end

     0   :  { %vm26_vm0 = vcmask 1046528   ;;  %s346_s25 = smov 32   ;;  %s347_s26 = smov 16   ;;  %v348_v15 = vmov 0.0   ;;  %s472_s0 = inlined_call_operand.vmem [shape: f32[2,14,16], index: 0, kind: input, shape index: {}]   ;;  %s473_s1 = inlined_call_operand.vmem [shape: f32[48,128], index: 1, kind: input, shape index: {}]   ;;  %s474_s2 = inlined_call_operand.vmem [shape: f32[1,128], index: 2, kind: input, shape index: {}]   ;;  %s475_s3 = inlined_call_operand.vmem [shape: f32[12,128], index: 3, kind: input, shape index: {}]   ;;  %s476_s4 = inlined_call_operand.hbm [shape: f32[2,128], index: 4, kind: output, shape index: {}]  }
   0x1   :  { %v379_v0 = vld [vmem:[%s472_s0 + $0x8] sm:$0x3f]  ;;  %v384_v1 = vld [vmem:[%s472_s0 + $0x10] sm:$0xff]  ;;  %v391_v4 = vld [vmem:[%s472_s0 + $0x18] sm:$0x3f]  ;;  %294 = vmatprep.subr.mxu1 %v348_v15  ;;  %273 = vmatprep.subr.mxu0 %v348_v15 }
   0x2   :  { %v47_v2 = vrot.slane %v379_v0, 2  ;;  %v28_v3 = vrot.slane %v379_v0, 1  ;;  %v30_v5 = vrot.slane %v384_v1, 1  ;;  %v397_v6 = vld [vmem:[%s472_s0] sm:$0xff]  ;;  %v31_v7 = vrot.slane %v391_v4, 1  ;;  %v79_v9 = vld [vmem:[%s473_s1 + $0x28] sm:$0xff] }
   0x3   :  { %v27_v8 = vrot.slane %v397_v6, 1  ;;  %v49_v10 = vrot.slane %v384_v1, 2  ;;  %v50_v13 = vrot.slane %v391_v4, 2  ;;  %v46_v14 = vrot.slane %v397_v6, 2 }
   0x4   :  { %54 = vrot.lane.b32.xlu1 %v47_v2, %s346_s25  ;;  %35 = vrot.lane.b32.xlu0 %v28_v3, %s347_s26  ;;  %v32_v11 = vsel %vm26_vm0, %v30_v5, %v31_v7 }
   0x5   :  { %v29_v12 = vsel %vm26_vm0, %v27_v8, %v28_v3 }
   0x6   :  { %9 = vsyncpa [#allocation3], 0  ;;  %vm45_vm1 = vcmask 1045504   ;;  %300 = vmatpush3.msra.mxu1 %v79_v9  ;;  %274 = vmatpush3.msra.mxu0 %v79_v9  ;;  %v78_v16 = vld [vmem:[%s473_s1 + $0x20] sm:$0xff]  ;;  %v77_v17 = vld [vmem:[%s473_s1 + $0x18] sm:$0xff]  ;;  %vm349_vm2 = vmmov 0  }
   0x7   :  { %295 = vmatprep.subr.mxu1 %v348_v15  ;;  %275 = vmatprep.subr.mxu0 %v348_v15  ;;  %v51_v18 = vsel %vm45_vm1, %v49_v10, %v50_v13  ;;  %v48_v19 = vsel %vm45_vm1, %v46_v14, %v47_v2  ;;  %v76_v20 = vld [vmem:[%s473_s1 + $0x10] sm:$0xff]  ;;  %v75_v21 = vld [vmem:[%s473_s1 + $0x8] sm:$0xff]  ;;  %v74_v22 = vld [vmem:[%s473_s1] sm:$0xff]  ;;  %vm64_vm3 = vcmask 130048   ;;  %vm69_vm4 = vcmask 261120  }
   0x8   :  { %37 = vrot.lane.b32.xlu0 %v32_v11, %s347_s26  ;;  %33 = vrot.lane.b32.xlu1 %v29_v12, %s347_s26  ;;  %vm102_vm5 = vcmask 392192   ;;  %v260_v44 = vld [vmem:[%s474_s2] ss:$0 sm:$0xff]  ;;  %v205_v63 = vld [vmem:[%s475_s3 + $0x8] sm:$0xf]  ;;  %vm223_vm6 = vcmask 1043456  }
   0x9   :  { %301 = vmatpush3.msra.mxu1 %v78_v16  ;;  %276 = vmatpush3.msra.mxu0 %v78_v16  ;;  %v92_v45 = vcombine.high %v260_v44, %v260_v44  ;;  %v97_v46 = vcombine.low %v260_v44, %v260_v44  ;;  %v204_v61 = vld [vmem:[%s475_s3] sm:$0xff]  ;;  %s350_s3 = smov [#allocation2]   ;;  %vm242_vm7 = vcmask 1041409  }
   0xa   :  { %296 = vmatprep.subr.mxu1 %v348_v15  ;;  %277 = vmatprep.subr.mxu0 %v348_v15  ;;  %s252_s14 = sshll.u32 %s350_s3, 4  ;;  %s253_s14 = int_to_ptr.vmem [resolvable:$true] %s252_s14 }
   0xb   :  { %302 = vmatpush3.msra.mxu1 %v77_v17  ;;  %278 = vmatpush3.msra.mxu0 %v77_v17  ;;  %v96_v47 = vcombine.low %v260_v44, %v92_v45  ;;  %v98_v52 = vcombine.low %v92_v45, %v260_v44  ;;  %s324_s15 = scalar_lea.vmem %s253_s14, 32  ;;  %p329_p1 = scmp.lt.s32.totalorder %s253_s14, %s253_s14 }
   0xc   :  { %56 = vrot.lane.b32.xlu0 %v51_v18, %s346_s25  ;;  %52 = vrot.lane.b32.xlu1 %v48_v19, %s346_s25  ;;  %p325_p0 = scmp.ne.s32.totalorder %s253_s14, %s324_s15  ;;  %p330_p2 = scmp.lt.s32.totalorder %s324_s15, %s324_s15 }
   0xd   :  { %297 = vmatprep.subr.mxu1 %v348_v15  ;;  %279 = vmatprep.subr.mxu0 %v348_v15 }
   0xe   :  { %303 = vmatpush3.msra.mxu1 %v76_v20  ;;  %280 = vmatpush3.msra.mxu0 %v76_v20  ;;  %p331_p3 = por %p330_p2, %p329_p1 }
   0xf   :  { %298 = vmatprep.subr.mxu1 %v348_v15  ;;  %281 = vmatprep.subr.mxu0 %v348_v15 }
  0x10   :  { %39 = vrot.lane.b32.xlu0 %v31_v7, %s347_s26  ;;  %58 = vrot.lane.b32.xlu1 %v50_v13, %s346_s25  ;;  %p332_p4 = pnand %p331_p3, %p325_p0 }
  0x11   :  { %304 = vmatpush3.msra.mxu1 %v75_v21  ;;  %282 = vmatpush3.msra.mxu0 %v75_v21 }
  0x12   :  { %299 = vmatprep.subr.mxu1 %v348_v15  ;;  %288 = vmatprep.mubr.msk.f32.mxu1 %vm349_vm2, %v348_v15 }
  0x13   :  { %305 = vmatpush3.msra.mxu1 %v74_v22  ;;  %283 = vmatprep.subr.mxu0 %v348_v15 }
  0x14   :  { %284 = vmatpush3.msra.mxu0 %v74_v22  ;;  %285 = vmatprep.mubr.msk.f32.mxu0 %vm349_vm2, %v348_v15 }
  0x76   :  { %v55_v23 = vpop.permute.xlu1 %54  ;;  %v36_v24 = vpop.permute.xlu0 %35 }
  0x77   :  { %v66_v27 = vsel %vm64_vm3, %v379_v0, %v36_v24  ;;  %v207_v0 = vcombine.high %v204_v61, %v204_v61 }
  0x78   :  { %v71_v32 = vsel %vm69_vm4, %v66_v27, %v55_v23 }
  0x7a   :  { %v38_v25 = vpop.permute.xlu0 %37  ;;  %v34_v26 = vpop.permute.xlu1 %33 }
  0x7b   :  { %v67_v28 = vsel %vm64_vm3, %v384_v1, %v38_v25  ;;  %v65_v29 = vsel %vm64_vm3, %v397_v6, %v34_v26 }
  0x7e   :  { %v57_v30 = vpop.permute.xlu0 %56  ;;  %v53_v31 = vpop.permute.xlu1 %52 }
  0x7f   :  { %v72_v33 = vsel %vm69_vm4, %v67_v28, %v57_v30  ;;  %v70_v34 = vsel %vm69_vm4, %v65_v29, %v53_v31 }
  0x80   :  { %v94_v35 = vcombine.low %v71_v32, %v72_v33  ;;  %v90_v36 = vcombine.high %v70_v34, %v70_v34  ;;  %v91_v40 = vcombine.high %v72_v33, %v72_v33 }
  0x82   :  { %v93_v37 = vcombine.low %v70_v34, %v90_v36  ;;  %289 = vmatmul.mubr.msk.f32.vlgmr.msra.gmra.mxu1 %vm102_vm5, %v94_v35  ;;  %v40_v38 = vpop.permute.xlu0 %39  ;;  %v59_v39 = vpop.permute.xlu1 %58 }
  0x83   :  { %v68_v41 = vsel %vm64_vm3, %v391_v4, %v40_v38  ;;  %291 = vmatprep.mubr.msk.f32.mxu1 %vm349_vm2, %v348_v15 }
  0x84   :  { %v73_v42 = vsel %vm69_vm4, %v68_v41, %v59_v39  ;;  %286 = vmatmul.mubr.msk.f32.vlgmr.msra.gmra.mxu0 %vm102_vm5, %v93_v37 }
  0x85   :  { %v95_v43 = vcombine.low %v91_v40, %v73_v42 }
  0x87   :  { %292 = vmatmul.mubr.msk.f32.gmra.mxu1 %vm102_vm5, %v95_v43 }
 0x142   :  { %v180_v48 = vpop.f32.mrf.mxu1 }
 0x143   :  { %v181_v49 = vadd.f32 %v180_v48, %v97_v46 }
 0x144   :  { %v175_v50 = vpop.f32.mrf.mxu0  ;;  %v290_v51 = vpop.f32.mrf.mxu1 }
 0x145   :  { %v193_v53 = vcombine.high %v181_v49, %v181_v49  ;;  %v176_v54 = vadd.f32 %v175_v50, %v96_v47  ;;  %312 = vtanh.f32 %v181_v49 }
 0x146   :  { %v287_v55 = vpop.f32.mrf.mxu0 }
 0x147   :  { %314 = vtanh.f32 %v193_v53  ;;  %v192_v56 = vcombine.high %v176_v54, %v176_v54  ;;  %v185_v57 = vpop.f32.mrf.mxu1 }
 0x148   :  { %316 = vtanh.f32 %v176_v54  ;;  %v186_v58 = vadd.f32 %v185_v57, %v98_v52 }
 0x149   :  { %318 = vtanh.f32 %v192_v56  ;;  %v293_v59 = vpop.f32.mrf.mxu1 }
 0x14a   :  { %v194_v60 = vcombine.high %v186_v58, %v186_v58  ;;  %320 = vtanh.f32 %v186_v58 }
 0x14c   :  { %322 = vtanh.f32 %v194_v60 }
 0x152   :  { %v313_v62 = vpop.eup %312 }
 0x153   :  { %v211_v4 = vadd.f32 %v313_v62, %v205_v63 }
 0x154   :  { %v315_v1 = vpop.eup %314 }
 0x155   :  { %v317_v2 = vpop.eup %316  ;;  %v212_v8 = vadd.f32 %v315_v1, %v204_v61  ;;  %v224_v14 = vsel %vm223_vm6, %v211_v4, -inf }
 0x156   :  { %v319_v3 = vpop.eup %318  ;;  %v209_v6 = vadd.f32 %v317_v2, %v204_v61 }
 0x157   :  { %v321_v5 = vpop.eup %320  ;;  %v210_v7 = vadd.f32 %v319_v3, %v207_v0 }
 0x158   :  { %v213_v9 = vadd.f32 %v321_v5, %v207_v0 }
 0x159   :  { %v323_v10 = vpop.eup %322  ;;  %v219_v11 = vcombine.low %v209_v6, %v210_v7 }
 0x15a   :  { %v214_v12 = vadd.f32 %v323_v10, %v205_v63  ;;  %v220_v13 = vcombine.low %v212_v8, %v213_v9 }
 0x15b   :  { %v225_v15 = vmax.f32 %v219_v11, %v224_v14 }
 0x15c   :  { %v232_v16 = vsel %vm223_vm6, %v214_v12, -inf }
 0x15d   :  { %v226_v17 = vrot.slane %v225_v15, 4  ;;  %v233_v18 = vmax.f32 %v220_v13, %v232_v16 }
 0x15f   :  { %v227_v19 = vmax.f32 %v225_v15, %v226_v17  ;;  %v234_v20 = vrot.slane %v233_v18, 4 }
 0x161   :  { %v228_v21 = vrot.slane %v227_v19, 2  ;;  %v235_v22 = vmax.f32 %v233_v18, %v234_v20 }
 0x163   :  { %v229_v23 = vmax.f32 %v227_v19, %v228_v21  ;;  %v236_v24 = vrot.slane %v235_v22, 2 }
 0x165   :  { %v230_v25 = vrot.slane %v229_v23, 1  ;;  %v237_v26 = vmax.f32 %v235_v22, %v236_v24 }
 0x167   :  { %v238_v27 = vrot.slane %v237_v26, 1  ;;  %v231_v28 = vmax.f32 %v229_v23, %v230_v25 }
 0x169   :  { %v239_v29 = vmax.f32 %v237_v26, %v238_v27 }
 0x16b   :  { %v243_v30 = vsel %vm242_vm7, %v239_v29, %v231_v28 }
 0x16c   :  { %245 = vst [vmem:[#allocation2] sm:$0x3] %v243_v30 }
 0x16d   :  { %335 = shalt.err (!%p332_p4)
}
 0x16e   :  { %255 = dma.vmem_to_hbm [thread:$0]  %s253_s14, 32, %s476_s4, [#allocation3]  }
 0x16f   :  { %344 = dma.done.wait [#allocation3], 32  }
 0x170   :  { %345 = vsyncadd [#allocation3], 4294967264 }
 0x171   :  { %259 = vsyncpa [#allocation3], 1 }

</bundles_post_ra>
